<compile_context>
chip_gen: v7x
topology: tpu7x:2x2x1
jax: 0.10.0
libtpu: 0.0.40
codegen_flags: <defaults>
</compile_context>

<pallas_src>
import jax
import jax.numpy as jnp
from jax.experimental import pallas as pl
from jax.experimental.pallas import tpu as pltpu


# ------------------------------------------------------------------ kernel ---
def _rope_kernel(tbl_ref, xq_ref, xk_ref, oq_ref, ok_ref):
    # tbl: (2, t_blk, L) = [A ; Bmix]; xq/xk: (bh*_blk, t_blk, L), all x.dtype.
    a = tbl_ref[0][None]        # (1, t_blk, L), broadcast over the bh axis
    bmix = tbl_ref[1][None]

    L = xq_ref.shape[-1]
    # Even interleaved lanes pair with their right neighbour (x[2i+1]); odd
    # lanes with their left neighbour (x[2i]).  The parity select means the
    # roll wrap-around / position-boundary lanes are never used, so any lane
    # fold width is correct.
    even = jax.lax.broadcasted_iota(jnp.int32, (1, 1, L), 2) % 2 == 0

    def rot(x):
        up = pltpu.roll(x, L - 1, axis=2)   # up[j] = x[(j + 1) % L]
        dn = pltpu.roll(x, 1, axis=2)       # dn[j] = x[(j - 1) % L]
        nb = jnp.where(even, up, dn)
        #   out[2i]   = x[2i]  *cos + x[2i+1]*(-sin)
        #   out[2i+1] = x[2i+1]*sin + x[2i]  *(+sin)   <- reference quirk
        return x * a + nb * bmix

    oq_ref[...] = rot(xq_ref[...])
    ok_ref[...] = rot(xk_ref[...])


# ------------------------------------------------------------------ tables ---
def _cos_sin(head_dim, max_block_size, omega):
    half = head_dim // 2
    i = jnp.arange(half, dtype=jnp.float32)
    inv_freq = 1.0 / (omega ** (2.0 * i / head_dim))
    pos = jnp.arange(max_block_size, dtype=jnp.float32)
    angles = pos[:, None] * inv_freq[None, :]            # (T_max, half)
    return jnp.cos(angles), jnp.sin(angles)


def make_rope_tables(head_dim, max_block_size, omega=10000.0):
    """Stacked, pre-interleaved multiplier table, shape (2, T_max, head_dim).

    table[0] (A)    multiplies x itself:         even lanes cos, odd lanes sin.
    table[1] (Bmix) multiplies the pair partner:  even lanes -sin, odd lanes sin.
    Built once, like the torch buffers.
    """
    cos, sin = _cos_sin(head_dim, max_block_size, omega)
    A = jnp.stack([cos, sin], axis=-1).reshape(max_block_size, head_dim)
    Bmix = jnp.stack([-sin, sin], axis=-1).reshape(max_block_size, head_dim)
    return jnp.stack([A, Bmix], axis=0)                  # (2, T_max, C)


# ----------------------------------------------------------------- helpers ---
def _lane_fold(T, C, max_lanes=512):
    """Largest fold f (T % f == 0, f*C <= max_lanes), preferring f*C % 128 == 0."""
    fmax = max(1, min(max_lanes // C, T))
    best128, best_any = 0, 1
    for f in range(1, fmax + 1):
        if T % f:
            continue
        best_any = f
        if (f * C) % 128 == 0:
            best128 = f
    return best128 if best128 else best_any


def _chip_budget():
    """Return (target q+k input bytes per grid step, scoped-VMEM limit)."""
    try:
        phys = int(getattr(pltpu.get_tpu_info(), "vmem_capacity_bytes", 0))
    except Exception:
        phys = 0
    if phys >= (96 << 20):           # v5e / v6e: 128 MiB physical VMEM
        return 8 << 20, 96 << 20
    if phys > 0:                     # v7x: 64 MiB physical VMEM per TC
        return 6 << 20, 48 << 20
    return 4 << 20, 40 << 20         # unknown -> conservative but > v5e default


def _round_down(x, m):
    return max(m, (x // m) * m)


def _choose_blocks(BHq, BHk, Tf, L, itemsize, target_bytes):
    row_bytes = L * itemsize
    sub = max(8, 32 // itemsize)     # dtype-native sublane multiple
    full_bytes = (BHq + BHk) * Tf * row_bytes

    t_blk = Tf
    if full_bytes <= target_bytes:
        n_bh = 1
    else:
        # Tile BH first so t_blk can stay == Tf (table fetched once).
        n_bh = min(int(pl.cdiv(full_bytes, target_bytes)), max(BHq, BHk))
    bhq_blk = int(pl.cdiv(BHq, n_bh))
    bhk_blk = int(pl.cdiv(BHk, n_bh))

    step_bytes = (bhq_blk + bhk_blk) * Tf * row_bytes
    if step_bytes > target_bytes and Tf > sub:
        t_blk = min(Tf, _round_down(
            target_bytes // ((bhq_blk + bhk_blk) * row_bytes), sub))
    return bhq_blk, bhk_blk, t_blk


# ----------------------------------------------------------------- wrapper ---
def mistral_rope_pallas(xq, xk, table):
    """Forward pass of MistralRoPE; one pallas_call for q and k (GQA-safe)."""
    B, nhq, T, C = xq.shape
    Bk, nhk, Tk, Ck = xk.shape
    assert C % 2 == 0 and (T, C) == (Tk, Ck) and B == Bk
    assert xq.dtype == xk.dtype
    BHq, BHk = B * nhq, Bk * nhk

    f = _lane_fold(T, C)
    Tf, L = T // f, C * f

    # Slice to T, cast once (shared by q and k), lane-fold.  All reshapes here
    # are contiguous -> free.
    tbl = table[:, :T].astype(xq.dtype).reshape(2, Tf, L)
    xqr = xq.reshape(BHq, Tf, L)
    xkr = xk.reshape(BHk, Tf, L)

    itemsize = jnp.dtype(xq.dtype).itemsize
    target_bytes, vmem_limit = _chip_budget()
    bhq_blk, bhk_blk, t_blk = _choose_blocks(BHq, BHk, Tf, L, itemsize,
                                             target_bytes)

    num_t = int(pl.cdiv(Tf, t_blk))
    num_bh = max(int(pl.cdiv(BHq, bhq_blk)), int(pl.cdiv(BHk, bhk_blk)))
    # Give v7x's two TensorCores >= 2 grid steps, but only when each half-block
    # is still >= ~1 MiB (so the split is free on single-TC v5e/v6e).
    if (num_t * num_bh == 1 and BHq >= 2
            and (bhq_blk + bhk_blk) * t_blk * L * itemsize >= (2 << 20)):
        bhq_blk = int(pl.cdiv(BHq, 2))
        bhk_blk = int(pl.cdiv(BHk, 2))
        num_bh = 2

    # Grid: t-blocks MAJOR, BH-blocks MINOR -> table block index (0, t, 0) is
    # constant across consecutive steps, so Pallas skips re-fetching it.
    # (If "parallel" does not shard across v7x's cores, the BH axis could be
    # marked pltpu.CORE_PARALLEL instead.)
    grid = (num_t, num_bh)
    tbl_spec = pl.BlockSpec((2, t_blk, L), lambda t, b: (0, t, 0))
    xq_spec = pl.BlockSpec((bhq_blk, t_blk, L), lambda t, b: (b, t, 0))
    xk_spec = pl.BlockSpec((bhk_blk, t_blk, L), lambda t, b: (b, t, 0))

    q_out, k_out = pl.pallas_call(
        _rope_kernel,
        out_shape=(jax.ShapeDtypeStruct((BHq, Tf, L), xq.dtype),
                   jax.ShapeDtypeStruct((BHk, Tf, L), xk.dtype)),
        grid_spec=pltpu.PrefetchScalarGridSpec(
            num_scalar_prefetch=0,
            grid=grid,
            in_specs=[tbl_spec, xq_spec, xk_spec],
            out_specs=(xq_spec, xk_spec),
        ),
        compiler_params=pltpu.CompilerParams(
            dimension_semantics=("parallel", "parallel"),
            vmem_limit_bytes=vmem_limit,
        ),
    )(tbl, xqr, xkr)
    return q_out.reshape(B, nhq, T, C), k_out.reshape(Bk, nhk, T, C)


# --------------------------------------------------------------- reference ---
def mistral_rope_ref(xq, xk, cos_cached, sin_cached):
    """Pure-JAX transcription of the PyTorch forward (same formula/quirk)."""
    T, C = xq.shape[2], xq.shape[3]
    half = C // 2
    sin = sin_cached[:T, :half][None, None]
    cos = cos_cached[:T, :half][None, None]

    def rot(x):
        s = sin.astype(x.dtype)
        c = cos.astype(x.dtype)
        x_ = x.reshape(*x.shape[:-1], half, 2)
        xe, xo = x_[..., 0], x_[..., 1]
        rot_even = xe * c - xo * s
        rot_odd = xe * s + xo * s          # exactly as in the reference module
        return jnp.stack([rot_even, rot_odd], axis=-1).reshape(*x.shape)

    return rot(xq), rot(xk)


# -------------------------------------------------------------------- main ---
if __name__ == "__main__":
    HEAD_DIM = 32
    MAX_BLOCK = 64
    OMEGA = 10000.0
    B, NH_Q, NH_K, T = 2, 4, 2, 8       # GQA-style: fewer KV heads than Q heads

    table = make_rope_tables(HEAD_DIM, MAX_BLOCK, OMEGA)
    cos_cached, sin_cached = _cos_sin(HEAD_DIM, MAX_BLOCK, OMEGA)

    key = jax.random.PRNGKey(0)
    kq, kk = jax.random.split(key)
    xq = jax.random.normal(kq, (B, NH_Q, T, HEAD_DIM), dtype=jnp.float32)
    xk = jax.random.normal(kk, (B, NH_K, T, HEAD_DIM), dtype=jnp.float32)

    q_out, k_out = mistral_rope_pallas(xq, xk, table)
    jax.block_until_ready((q_out, k_out))

    q_ref, k_ref = mistral_rope_ref(xq, xk, cos_cached, sin_cached)
    assert q_out.shape == xq.shape and k_out.shape == xk.shape
    assert q_out.dtype == xq.dtype and k_out.dtype == xk.dtype
    assert jnp.allclose(q_out, q_ref, atol=1e-5, rtol=1e-5)
    assert jnp.allclose(k_out, k_ref, atol=1e-5, rtol=1e-5)

    print("KERNEL_OK")
</pallas_src>

<mosaic_0001>
module attributes {stable_mosaic.version = 11 : i64} {
  func.func @_rope_kernel(%arg0: i32, %arg1: i32, %arg2: memref<2x1x256xf32, #tpu.memory_space<vmem>>, %arg3: memref<8x1x256xf32, #tpu.memory_space<vmem>>, %arg4: memref<4x1x256xf32, #tpu.memory_space<vmem>>, %arg5: memref<8x1x256xf32, #tpu.memory_space<vmem>>, %arg6: memref<4x1x256xf32, #tpu.memory_space<vmem>>) attributes {dimension_semantics = [#tpu.dimension_semantics<parallel>, #tpu.dimension_semantics<parallel>], iteration_bounds = array<i64: 1, 1>, scalar_prefetch = 0 : i64, scratch_operands = 0 : i64, tpu.core_type = #tpu.core_type<tc>, window_params = [{transform_indices = @transform_0, window_bounds = array<i64: 2, 1, 256>}, {transform_indices = @transform_1, window_bounds = array<i64: 8, 1, 256>}, {transform_indices = @transform_2, window_bounds = array<i64: 4, 1, 256>}, {transform_indices = @transform_3, window_bounds = array<i64: 8, 1, 256>}, {transform_indices = @transform_4, window_bounds = array<i64: 4, 1, 256>}]} {
    %c0 = arith.constant 0 : index
    %c0_0 = arith.constant 0 : index
    %c0_1 = arith.constant 0 : index
    %0 = vector.load %arg2[%c0, %c0_0, %c0_1] : memref<2x1x256xf32, #tpu.memory_space<vmem>>, vector<1x1x256xf32>
    %1 = vector.shape_cast %0 : vector<1x1x256xf32> to vector<1x256xf32>
    %2 = vector.shape_cast %1 : vector<1x256xf32> to vector<1x1x256xf32>
    %c1 = arith.constant 1 : index
    %c0_2 = arith.constant 0 : index
    %c0_3 = arith.constant 0 : index
    %3 = vector.load %arg2[%c1, %c0_2, %c0_3] : memref<2x1x256xf32, #tpu.memory_space<vmem>>, vector<1x1x256xf32>
    %4 = vector.shape_cast %3 : vector<1x1x256xf32> to vector<1x256xf32>
    %5 = vector.shape_cast %4 : vector<1x256xf32> to vector<1x1x256xf32>
    %6 = tpu.iota {dimensions = array<i32: 2>} : vector<1x1x256xi32>
    %c2_i32 = arith.constant 2 : i32
    %c0_i32 = arith.constant 0 : i32
    %7 = arith.cmpi eq, %c2_i32, %c0_i32 : i32
    %c1_i32 = arith.constant 1 : i32
    %8 = arith.select %7, %c1_i32, %c2_i32 : i32
    %9 = vector.broadcast %8 : i32 to vector<1x1x256xi32>
    %10 = arith.remsi %6, %9 : vector<1x1x256xi32>
    %c0_i32_4 = arith.constant 0 : i32
    %11 = vector.broadcast %c0_i32_4 : i32 to vector<1x1x256xi32>
    %12 = arith.cmpi ne, %10, %11 : vector<1x1x256xi32>
    %c0_i32_5 = arith.constant 0 : i32
    %13 = vector.broadcast %c0_i32_5 : i32 to vector<1x1x256xi32>
    %14 = arith.cmpi slt, %10, %13 : vector<1x1x256xi32>
    %c0_i32_6 = arith.constant 0 : i32
    %15 = arith.cmpi slt, %8, %c0_i32_6 : i32
    %16 = vector.broadcast %15 : i1 to vector<1x1x256xi1>
    %17 = vector.broadcast %16 : vector<1x1x256xi1> to vector<1x1x256xi1>
    %18 = arith.xori %14, %17 : vector<1x1x256xi1>
    %19 = arith.andi %18, %12 : vector<1x1x256xi1>
    %20 = vector.broadcast %8 : i32 to vector<1x1x256xi32>
    %21 = arith.addi %10, %20 : vector<1x1x256xi32>
    %22 = arith.select %19, %21, %10 : vector<1x1x256xi1>, vector<1x1x256xi32>
    %c0_i32_7 = arith.constant 0 : i32
    %23 = vector.broadcast %c0_i32_7 : i32 to vector<1x1x256xi32>
    %24 = arith.cmpi eq, %22, %23 : vector<1x1x256xi32>
    %c0_8 = arith.constant 0 : index
    %c0_9 = arith.constant 0 : index
    %c0_10 = arith.constant 0 : index
    %25 = vector.load %arg3[%c0_8, %c0_9, %c0_10] : memref<8x1x256xf32, #tpu.memory_space<vmem>>, vector<8x1x256xf32>
    %c255_i32 = arith.constant 255 : i32
    %26 = tpu.dynamic_rotate %25 by %c255_i32 dim 2 : vector<8x1x256xf32>, i32 -> vector<8x1x256xf32>
    %c1_i32_11 = arith.constant 1 : i32
    %27 = tpu.dynamic_rotate %25 by %c1_i32_11 dim 2 : vector<8x1x256xf32>, i32 -> vector<8x1x256xf32>
    %28 = vector.shape_cast %24 : vector<1x1x256xi1> to vector<1x1x256xi1>
    %29 = vector.broadcast %28 : vector<1x1x256xi1> to vector<8x1x256xi1>
    %30 = arith.select %29, %26, %27 : vector<8x1x256xi1>, vector<8x1x256xf32>
    %31 = vector.broadcast %2 : vector<1x1x256xf32> to vector<8x1x256xf32>
    %32 = arith.mulf %25, %31 : vector<8x1x256xf32>
    %33 = vector.broadcast %5 : vector<1x1x256xf32> to vector<8x1x256xf32>
    %34 = arith.mulf %30, %33 : vector<8x1x256xf32>
    %35 = arith.addf %32, %34 : vector<8x1x256xf32>
    %c0_12 = arith.constant 0 : index
    %c0_13 = arith.constant 0 : index
    %c0_14 = arith.constant 0 : index
    %36 = vector.load %arg5[%c0_12, %c0_13, %c0_14] : memref<8x1x256xf32, #tpu.memory_space<vmem>>, vector<8x1x256xf32>
    tpu.vector_store %arg5[%c0_12, %c0_13, %c0_14], %35 {strides = array<i32>} : memref<8x1x256xf32, #tpu.memory_space<vmem>>, vector<8x1x256xf32>,
    %c0_15 = arith.constant 0 : index
    %c0_16 = arith.constant 0 : index
    %c0_17 = arith.constant 0 : index
    %37 = vector.load %arg4[%c0_15, %c0_16, %c0_17] : memref<4x1x256xf32, #tpu.memory_space<vmem>>, vector<4x1x256xf32>
    %c255_i32_18 = arith.constant 255 : i32
    %38 = tpu.dynamic_rotate %37 by %c255_i32_18 dim 2 : vector<4x1x256xf32>, i32 -> vector<4x1x256xf32>
    %c1_i32_19 = arith.constant 1 : i32
    %39 = tpu.dynamic_rotate %37 by %c1_i32_19 dim 2 : vector<4x1x256xf32>, i32 -> vector<4x1x256xf32>
    %40 = vector.shape_cast %24 : vector<1x1x256xi1> to vector<1x1x256xi1>
    %41 = vector.broadcast %40 : vector<1x1x256xi1> to vector<4x1x256xi1>
    %42 = arith.select %41, %38, %39 : vector<4x1x256xi1>, vector<4x1x256xf32>
    %43 = vector.broadcast %2 : vector<1x1x256xf32> to vector<4x1x256xf32>
    %44 = arith.mulf %37, %43 : vector<4x1x256xf32>
    %45 = vector.broadcast %5 : vector<1x1x256xf32> to vector<4x1x256xf32>
    %46 = arith.mulf %42, %45 : vector<4x1x256xf32>
    %47 = arith.addf %44, %46 : vector<4x1x256xf32>
    %c0_20 = arith.constant 0 : index
    %c0_21 = arith.constant 0 : index
    %c0_22 = arith.constant 0 : index
    %48 = vector.load %arg6[%c0_20, %c0_21, %c0_22] : memref<4x1x256xf32, #tpu.memory_space<vmem>>, vector<4x1x256xf32>
    tpu.vector_store %arg6[%c0_20, %c0_21, %c0_22], %47 {strides = array<i32>} : memref<4x1x256xf32, #tpu.memory_space<vmem>>, vector<4x1x256xf32>,
    return
  }
  func.func @transform_0(%arg0: i32, %arg1: i32) -> (i32, i32, i32) {
    %c0_i32 = arith.constant 0 : i32
    %c0_i32_0 = arith.constant 0 : i32
    %c0_i32_1 = arith.constant 0 : i32
    return %c0_i32, %arg0, %c0_i32_0 : i32, i32, i32
  }
  func.func @transform_1(%arg0: i32, %arg1: i32) -> (i32, i32, i32) {
    %c0_i32 = arith.constant 0 : i32
    %c0_i32_0 = arith.constant 0 : i32
    return %arg1, %arg0, %c0_i32 : i32, i32, i32
  }
  func.func @transform_2(%arg0: i32, %arg1: i32) -> (i32, i32, i32) {
    %c0_i32 = arith.constant 0 : i32
    %c0_i32_0 = arith.constant 0 : i32
    return %arg1, %arg0, %c0_i32 : i32, i32, i32
  }
  func.func @transform_3(%arg0: i32, %arg1: i32) -> (i32, i32, i32) {
    %c0_i32 = arith.constant 0 : i32
    %c0_i32_0 = arith.constant 0 : i32
    return %arg1, %arg0, %c0_i32 : i32, i32, i32
  }
  func.func @transform_4(%arg0: i32, %arg1: i32) -> (i32, i32, i32) {
    %c0_i32 = arith.constant 0 : i32
    %c0_i32_0 = arith.constant 0 : i32
    return %arg1, %arg0, %c0_i32 : i32, i32, i32
  }
}

</mosaic_0001>

<bundles_post_ra>
// kernel: tpu_custom_call.1
= control target key start
LH: loop header
LB: loop body
LE: loop exit
PB: predicated region body
PF: predicated region fallthrough
CT: control target
= control target key end

     0   :  { %10 = vsyncpa [#allocation3], 0  ;;  %s1448_s0 = inlined_call_operand.hbm [shape: f32[2,1,256], index: 0, kind: input, shape index: {}]   ;;  %s1449_s1 = inlined_call_operand.hbm [shape: f32[8,1,256], index: 1, kind: input, shape index: {}]   ;;  %s1450_s2 = inlined_call_operand.hbm [shape: f32[4,1,256], index: 2, kind: input, shape index: {}]   ;;  %s1451_s3 = inlined_call_operand.hbm [shape: f32[8,1,256], index: 3, kind: output, shape index: {0}]   ;;  %s1452_s4 = inlined_call_operand.hbm [shape: f32[4,1,256], index: 4, kind: output, shape index: {1}]  }
   0x1   :  { %11 = vsyncpa [#allocation6], 0 }
   0x2   :  { %12 = vsyncpa [#allocation4], 0 }
   0x3   :  { %13 = vsyncpa [#allocation10], 0  ;;  %s862_s15 = smov [#allocation5]   ;;  %s863_s17 = smov [#allocation2]  }
   0x4   :  { %s31_s16 = sshll.u32 %s862_s15, 4  ;;  %s19_s18 = sshll.u32 %s863_s17, 4  ;;  %s32_s16 = int_to_ptr.vmem [resolvable:$true] %s31_s16  ;;  %s897_s18 = int_to_ptr.vmem [resolvable:$true] %s19_s18 }
   0x5   :  { %s744_s21 = scalar_lea.hbm %s1449_s1, 256 }
   0x6   :  { %p745_p0 = scmp.ne.s32.totalorder %s1449_s1, %s744_s21  ;;  %p748_p1 = scmp.lt.u32.totalorder %s744_s21, %s1449_s1 }
   0x8   :  { %p750_p2 = pnand %p748_p1, %p745_p0 }
   0xa   :  { %753 = shalt.err (!%p750_p2)
}
   0xb   :  { %s754_s26 = scalar_lea.vmem %s32_s16, 256  ;;  %p759_p4 = scmp.lt.s32.totalorder %s32_s16, %s32_s16 }
   0xc   :  { %p755_p3 = scmp.ne.s32.totalorder %s32_s16, %s754_s26  ;;  %p760_p5 = scmp.lt.s32.totalorder %s754_s26, %s754_s26 }
   0xe   :  { %p761_p6 = por %p760_p5, %p759_p4 }
  0x10   :  { %p762_p7 = pnand %p761_p6, %p755_p3 }
  0x12   :  { %765 = shalt.err (!%p762_p7)
}
  0x13   :  { %s864_s27 = smov 32   ;;  %s865_s28 = smov 2  }
  0x14   :  { %37 = dma.hbm_to_vmem [thread:$0]  %s1449_s1, 256, %s32_s16, [#allocation6], %s864_s27, %s864_s27, %s865_s28  }
  0x15   :  { %s766_s7 = scalar_lea.hbm %s1448_s0, 64 }
  0x16   :  { %p767_p8 = scmp.ne.s32.totalorder %s1448_s0, %s766_s7  ;;  %p770_p9 = scmp.lt.u32.totalorder %s766_s7, %s1448_s0 }
  0x18   :  { %p772_p10 = pnand %p770_p9, %p767_p8 }
  0x1a   :  { %775 = shalt.err (!%p772_p10)
}
  0x1b   :  { %s776_s12 = scalar_lea.vmem %s897_s18, 64  ;;  %p781_p12 = scmp.lt.s32.totalorder %s897_s18, %s897_s18 }
  0x1c   :  { %p777_p11 = scmp.ne.s32.totalorder %s897_s18, %s776_s12  ;;  %p782_p13 = scmp.lt.s32.totalorder %s776_s12, %s776_s12 }
  0x1e   :  { %p783_p0 = por %p782_p13, %p781_p12 }
  0x20   :  { %p784_p1 = pnand %p783_p0, %p777_p11 }
  0x22   :  { %787 = shalt.err (!%p784_p1)
}
  0x23   :  { %25 = dma.hbm_to_vmem [thread:$0]  %s1448_s0, 64, %s897_s18, [#allocation3], %s864_s27, %s864_s27, %s865_s28  }
  0x24   :  { %s866_s14 = smov [#allocation7]   ;;  %s788_s19 = scalar_lea.hbm %s1450_s2, 128 }
  0x25   :  { %s43_s15 = sshll.u32 %s866_s14, 4  ;;  %p789_p2 = scmp.ne.s32.totalorder %s1450_s2, %s788_s19  ;;  %s44_s15 = int_to_ptr.vmem [resolvable:$true] %s43_s15 }
  0x26   :  { %p792_p3 = scmp.lt.u32.totalorder %s788_s19, %s1450_s2 }
  0x28   :  { %p794_p4 = pnand %p792_p3, %p789_p2 }
  0x2a   :  { %797 = shalt.err (!%p794_p4)
}
  0x2b   :  { %s798_s24 = scalar_lea.vmem %s44_s15, 128  ;;  %p803_p6 = scmp.lt.s32.totalorder %s44_s15, %s44_s15 }
  0x2c   :  { %p799_p5 = scmp.ne.s32.totalorder %s44_s15, %s798_s24  ;;  %p804_p7 = scmp.lt.s32.totalorder %s798_s24, %s798_s24 }
  0x2e   :  { %p805_p8 = por %p804_p7, %p803_p6 }
  0x30   :  { %p806_p9 = pnand %p805_p8, %p799_p5 }
  0x32   :  { %809 = shalt.err (!%p806_p9)
}
  0x33   :  { %49 = dma.hbm_to_vmem [thread:$0]  %s1450_s2, 128, %s44_s15, [#allocation6], %s864_s27, %s864_s27, %s865_s28  }
  0x34   :  { %854 = dma.done.wait [#allocation3], 64  }
  0x35   :  { %855 = vsyncadd [#allocation3], 4294967232 }
  0x36   :  { %856 = dma.done.wait [#allocation6], 384  }
  0x37   :  { %857 = vsyncadd [#allocation6], 4294966912  ;;  %v62_v0 = vlaneseq  ;;  %v955_v3 = vld [vmem:[#allocation5 + $0x4] sm:$0x3]  ;;  %v957_v4 = vld [vmem:[#allocation5] sm:$0x3] }
  0x38   :  { %v963_v7 = vld [vmem:[#allocation5 + $0x6] sm:$0x3]  ;;  %v965_v8 = vld [vmem:[#allocation5 + $0x2] sm:$0x3]  ;;  %s867_s2 = smov 127   ;;  %s868_s25 = smov 1  }
  0x39   :  { %v950_v1 = vshrl.u32 %v62_v0, 7  ;;  %v973_v11 = vld [vmem:[#allocation5 + $0xa] sm:$0x3]  ;;  %v975_v12 = vld [vmem:[#allocation5 + $0x8] sm:$0x3]  ;;  %v1087_v60 = vand.u32 127, %v62_v0 }
  0x3a   :  { %v983_v15 = vld [vmem:[#allocation5 + $0xe] sm:$0x3]  ;;  %v985_v16 = vld [vmem:[#allocation5 + $0xc] sm:$0x3]  ;;  %v1036_v28 = vld [vmem:[#allocation7 + $0x2] sm:$0x3] }
  0x3b   :  { %v953_v2 = vsub.s32 0, %v950_v1  ;;  %v994_v19 = vsub.s32 1, %v950_v1  ;;  %v1038_v29 = vld [vmem:[#allocation7] sm:$0x3]  ;;  %v1046_v32 = vld [vmem:[#allocation7 + $0x6] sm:$0x3] }
  0x3c   :  { %v1048_v33 = vld [vmem:[#allocation7 + $0x4] sm:$0x3]  ;;  %v869_v58 = vmov 1966171168   ;;  %v64_v63 = vadd.s32 128, %v1087_v60  ;;  %vm219_vm0 = vcmp.lt.s32.totalorder %v1087_v60, 127 }
  0x3d   :  { %v126_v5 = vrot.slane %v955_v3, %v953_v2  ;;  %v110_v6 = vrot.slane %v957_v4, %v953_v2  ;;  %v134_v9 = vrot.slane %v963_v7, %v953_v2  ;;  %v118_v10 = vrot.slane %v965_v8, %v953_v2  ;;  %s870_s26 = smov [#allocation8]  }
  0x3e   :  { %v150_v13 = vrot.slane %v973_v11, %v953_v2  ;;  %v142_v14 = vrot.slane %v975_v12, %v953_v2  ;;  %v166_v17 = vrot.slane %v983_v15, %v953_v2  ;;  %v158_v18 = vrot.slane %v985_v16, %v953_v2  ;;  %s705_s29 = sshll.u32 %s870_s26, 4  ;;  %s706_s29 = int_to_ptr.vmem [resolvable:$true] %s705_s29 }
  0x3f   :  { %191 = vrot.lane.b32.xlu1 %v126_v5, %s867_s2  ;;  %187 = vrot.lane.b32.xlu0 %v110_v6, %s867_s2  ;;  %v122_v20 = vrot.slane %v965_v8, %v994_v19  ;;  %v114_v21 = vrot.slane %v957_v4, %v994_v19  ;;  %v138_v22 = vrot.slane %v963_v7, %v994_v19  ;;  %v358_v59 = vunpack.c.l.s4 %v869_v58  ;;  %s810_s30 = scalar_lea.vmem %s706_s29, 256  ;;  %p815_p11 = scmp.lt.s32.totalorder %s706_s29, %s706_s29 }
  0x40   :  { %v130_v23 = vrot.slane %v955_v3, %v994_v19  ;;  %v154_v24 = vrot.slane %v973_v11, %v994_v19  ;;  %v146_v25 = vrot.slane %v975_v12, %v994_v19  ;;  %v170_v26 = vrot.slane %v983_v15, %v994_v19  ;;  %p811_p10 = scmp.ne.s32.totalorder %s706_s29, %s810_s30  ;;  %p816_p12 = scmp.lt.s32.totalorder %s810_s30, %s810_s30 }
  0x41   :  { %v162_v27 = vrot.slane %v985_v16, %v994_v19  ;;  %v523_v30 = vrot.slane %v1036_v28, %v953_v2  ;;  %v515_v31 = vrot.slane %v1038_v29, %v953_v2  ;;  %v539_v34 = vrot.slane %v1046_v32, %v953_v2 }
  0x42   :  { %v531_v35 = vrot.slane %v1048_v33, %v953_v2  ;;  %v527_v36 = vrot.slane %v1036_v28, %v994_v19  ;;  %v519_v37 = vrot.slane %v1038_v29, %v994_v19  ;;  %v543_v38 = vrot.slane %v1046_v32, %v994_v19  ;;  %p817_p13 = por %p816_p12, %p815_p11 }
  0x43   :  { %193 = vrot.lane.b32.xlu1 %v134_v9, %s867_s2  ;;  %189 = vrot.lane.b32.xlu0 %v118_v10, %s867_s2  ;;  %v535_v39 = vrot.slane %v1048_v33, %v994_v19  ;;  %vm268_vm3 = vcmp.lt.s32.totalorder %v1087_v60, 1  ;;  %vm1175_vm4 = vcmp.lt.s32.totalorder %v62_v0, 256 }
  0x44   :  { %p818_p0 = pnand %p817_p13, %p811_p10 }
  0x47   :  { %197 = vrot.lane.b32.xlu1 %v150_v13, %s867_s2  ;;  %195 = vrot.lane.b32.xlu0 %v142_v14, %s867_s2 }
  0x4b   :  { %201 = vrot.lane.b32.xlu1 %v166_v17, %s867_s2  ;;  %199 = vrot.lane.b32.xlu0 %v158_v18, %s867_s2 }
  0x4f   :  { %205 = vrot.lane.b32.xlu1 %v122_v20, %s867_s2  ;;  %203 = vrot.lane.b32.xlu0 %v114_v21, %s867_s2 }
  0x53   :  { %209 = vrot.lane.b32.xlu1 %v138_v22, %s867_s2  ;;  %207 = vrot.lane.b32.xlu0 %v130_v23, %s867_s2 }
  0x57   :  { %213 = vrot.lane.b32.xlu1 %v154_v24, %s867_s2  ;;  %211 = vrot.lane.b32.xlu0 %v146_v25, %s867_s2 }
  0x5b   :  { %217 = vrot.lane.b32.xlu1 %v170_v26, %s867_s2  ;;  %215 = vrot.lane.b32.xlu0 %v162_v27, %s867_s2 }
  0x5f   :  { %238 = vrot.lane.b32.xlu1 %v118_v10, %s868_s25  ;;  %236 = vrot.lane.b32.xlu0 %v110_v6, %s868_s25  ;;  %v1096_v10 = vld [vmem:[#allocation2] sm:$0x3] }
  0x63   :  { %242 = vrot.lane.b32.xlu1 %v134_v9, %s868_s25  ;;  %240 = vrot.lane.b32.xlu0 %v126_v5, %s868_s25  ;;  %v359_v5 = vunpack.c.0.s8 %v358_v59 }
  0x67   :  { %246 = vrot.lane.b32.xlu1 %v150_v13, %s868_s25  ;;  %244 = vrot.lane.b32.xlu0 %v142_v14, %s868_s25  ;;  %v69_v13 = vand.u32 1, %v1087_v60  ;;  %v76_v14 = vand.u32 1, %v64_v63 }
  0x69   :  { %vm1131_vm1 = vcmp.eq.s32.totalorder %v69_v13, 0  ;;  %vm1135_vm2 = vcmp.eq.s32.totalorder %v76_v14, 0 }
  0x6b   :  { %250 = vrot.lane.b32.xlu1 %v166_v17, %s868_s25  ;;  %248 = vrot.lane.b32.xlu0 %v158_v18, %s868_s25  ;;  %v1100_v17 = vsub.s32 %v359_v5, %v950_v1  ;;  %v1104_v18 = vmul.f32 %v955_v3, %v1096_v10  ;;  %v1121_v1 = vmul.f32 %v973_v11, %v1096_v10 }
  0x6f   :  { %254 = vrot.lane.b32.xlu1 %v122_v20, %s868_s25  ;;  %252 = vrot.lane.b32.xlu0 %v114_v21, %s868_s25  ;;  %v61_v20 = vld [vmem:[#allocation2 + $0x2] sm:$0x3]  ;;  %v1109_v21 = vmul.f32 %v957_v4, %v1096_v10  ;;  %v1129_v4 = vmul.f32 %v975_v12, %v1096_v10 }
  0x70   :  { %v1148_v12 = vrot.slane %v61_v20, %v994_v19 }
  0x73   :  { %258 = vrot.lane.b32.xlu1 %v138_v22, %s868_s25  ;;  %256 = vrot.lane.b32.xlu0 %v130_v23, %s868_s25  ;;  %v1113_v22 = vmul.f32 %v963_v7, %v1096_v10  ;;  %v1117_v23 = vmul.f32 %v965_v8, %v1096_v10 }
  0x77   :  { %262 = vrot.lane.b32.xlu1 %v154_v24, %s868_s25  ;;  %260 = vrot.lane.b32.xlu0 %v146_v25, %s868_s25 }
  0x7b   :  { %266 = vrot.lane.b32.xlu1 %v170_v26, %s868_s25  ;;  %264 = vrot.lane.b32.xlu0 %v162_v27, %s868_s25  ;;  %v1145_v26 = vrot.slane %v61_v20, %v953_v2 }
  0x7f   :  { %554 = vrot.lane.b32.xlu1 %v523_v30, %s867_s2  ;;  %552 = vrot.lane.b32.xlu0 %v515_v31, %s867_s2 }
  0x83   :  { %558 = vrot.lane.b32.xlu1 %v539_v34, %s867_s2  ;;  %556 = vrot.lane.b32.xlu0 %v531_v35, %s867_s2 }
  0x87   :  { %562 = vrot.lane.b32.xlu1 %v527_v36, %s867_s2  ;;  %560 = vrot.lane.b32.xlu0 %v519_v37, %s867_s2 }
  0x8b   :  { %566 = vrot.lane.b32.xlu1 %v543_v38, %s867_s2  ;;  %564 = vrot.lane.b32.xlu0 %v535_v39, %s867_s2 }
  0x8f   :  { %578 = vrot.lane.b32.xlu1 %v523_v30, %s868_s25  ;;  %576 = vrot.lane.b32.xlu0 %v515_v31, %s868_s25 }
  0x93   :  { %582 = vrot.lane.b32.xlu1 %v539_v34, %s868_s25  ;;  %580 = vrot.lane.b32.xlu0 %v531_v35, %s868_s25 }
  0x97   :  { %586 = vrot.lane.b32.xlu1 %v527_v36, %s868_s25  ;;  %584 = vrot.lane.b32.xlu0 %v519_v37, %s868_s25 }
  0x9b   :  { %590 = vrot.lane.b32.xlu1 %v543_v38, %s868_s25  ;;  %588 = vrot.lane.b32.xlu0 %v535_v39, %s868_s25 }
  0xb1   :  { %v192_v40 = vpop.permute.xlu1 %191  ;;  %v188_v41 = vpop.permute.xlu0 %187 }
  0xb5   :  { %v194_v42 = vpop.permute.xlu1 %193  ;;  %v190_v43 = vpop.permute.xlu0 %189 }
  0xb9   :  { %v198_v44 = vpop.permute.xlu1 %197  ;;  %v1078_v45 = vpop.permute.xlu0 %195 }
  0xbd   :  { %v1080_v46 = vpop.permute.xlu1 %201  ;;  %v1082_v47 = vpop.permute.xlu0 %199 }
  0xc1   :  { %v206_v48 = vpop.permute.xlu1 %205  ;;  %v204_v49 = vpop.permute.xlu0 %203 }
  0xc2   :  { %v221_v8 = vsel %vm219_vm0, %v190_v43, %v206_v48  ;;  %v229_v11 = vsel %vm219_vm0, %v206_v48, %v190_v43  ;;  %v220_v27 = vsel %vm219_vm0, %v188_v41, %v204_v49  ;;  %v228_v30 = vsel %vm219_vm0, %v204_v49, %v188_v41 }
  0xc5   :  { %v210_v50 = vpop.permute.xlu1 %209  ;;  %v208_v51 = vpop.permute.xlu0 %207 }
  0xc6   :  { %v223_v31 = vsel %vm219_vm0, %v194_v42, %v210_v50  ;;  %v231_v34 = vsel %vm219_vm0, %v210_v50, %v194_v42  ;;  %v222_v35 = vsel %vm219_vm0, %v192_v40, %v208_v51  ;;  %v230_v2 = vsel %vm219_vm0, %v208_v51, %v192_v40 }
  0xc9   :  { %v214_v52 = vpop.permute.xlu1 %213  ;;  %v212_v53 = vpop.permute.xlu0 %211 }
  0xca   :  { %v225_v19 = vsel %vm219_vm0, %v198_v44, %v214_v52  ;;  %v233_v36 = vsel %vm219_vm0, %v214_v52, %v198_v44  ;;  %v232_v58 = vsel %vm219_vm0, %v212_v53, %v1078_v45 }
  0xcd   :  { %v218_v54 = vpop.permute.xlu1 %217  ;;  %v1084_v55 = vpop.permute.xlu0 %215 }
  0xce   :  { %v1200_v59 = vsel %vm219_vm0, %v1080_v46, %v218_v54  ;;  %v235_v63 = vsel %vm219_vm0, %v218_v54, %v1080_v46 }
  0xd1   :  { %v239_v56 = vpop.permute.xlu1 %238  ;;  %v237_v57 = vpop.permute.xlu0 %236 }
  0xd5   :  { %v243_v61 = vpop.permute.xlu1 %242  ;;  %v1089_v62 = vpop.permute.xlu0 %240 }
  0xd9   :  { %v1092_v6 = vpop.permute.xlu1 %246  ;;  %v1094_v9 = vpop.permute.xlu0 %244 }
  0xdd   :  { %v1123_v3 = vpop.permute.xlu1 %250  ;;  %v1125_v24 = vpop.permute.xlu0 %248 }
  0xe1   :  { %v255_v37 = vpop.permute.xlu1 %254  ;;  %v253_v38 = vpop.permute.xlu0 %252 }
  0xe2   :  { %v270_v39 = vsel %vm268_vm3, %v239_v56, %v255_v37  ;;  %v278_v41 = vsel %vm268_vm3, %v255_v37, %v239_v56  ;;  %v269_v42 = vsel %vm268_vm3, %v237_v57, %v253_v38  ;;  %v277_v40 = vsel %vm268_vm3, %v253_v38, %v237_v57 }
  0xe3   :  { %v291_v44 = vsel %vm1131_vm1, %v221_v8, %v278_v41  ;;  %v292_v48 = vsel %vm1135_vm2, %v229_v11, %v270_v39  ;;  %v289_v49 = vsel %vm1131_vm1, %v220_v27, %v277_v40  ;;  %v290_v50 = vsel %vm1135_vm2, %v228_v30, %v269_v42 }
  0xe4   :  { %v326_v51 = vmul.f32 %v1145_v26, %v291_v44  ;;  %v327_v52 = vmul.f32 %v1148_v12, %v292_v48  ;;  %v324_v0 = vmul.f32 %v1145_v26, %v289_v49  ;;  %v325_v56 = vmul.f32 %v1148_v12, %v290_v50 }
  0xe5   :  { %v224_v57 = vsel %vm219_vm0, %v1078_v45, %v212_v53  ;;  %v259_v5 = vpop.permute.xlu1 %258  ;;  %v257_v13 = vpop.permute.xlu0 %256 }
  0xe6   :  { %v371_v14 = vcombine.low %v326_v51, %v327_v52  ;;  %v356_v20 = vcombine.low %v324_v0, %v325_v56  ;;  %v272_v8 = vsel %vm268_vm3, %v243_v61, %v259_v5  ;;  %v280_v11 = vsel %vm268_vm3, %v259_v5, %v243_v61 }
  0xe7   :  { %v295_v45 = vsel %vm1131_vm1, %v223_v31, %v280_v11  ;;  %v296_v53 = vsel %vm1135_vm2, %v231_v34, %v272_v8  ;;  %v271_v46 = vsel %vm268_vm3, %v1089_v62, %v257_v13  ;;  %v279_v54 = vsel %vm268_vm3, %v257_v13, %v1089_v62 }
  0xe8   :  { %v378_v27 = vrot.slane %v371_v14, %v1100_v17  ;;  %v363_v30 = vrot.slane %v356_v20, %v1100_v17  ;;  %v330_v61 = vmul.f32 %v1145_v26, %v295_v45  ;;  %v331_v37 = vmul.f32 %v1148_v12, %v296_v53 }
  0xe9   :  { %v226_v31 = vsel %vm219_vm0, %v1082_v47, %v1084_v55  ;;  %v234_v34 = vsel %vm219_vm0, %v1084_v55, %v1082_v47  ;;  %v293_v62 = vsel %vm1131_vm1, %v222_v35, %v279_v54  ;;  %v294_v38 = vsel %vm1135_vm2, %v230_v2, %v271_v46  ;;  %v263_v39 = vpop.permute.xlu1 %262  ;;  %v261_v41 = vpop.permute.xlu0 %260 }
  0xea   :  { %v385_v42 = vrot.slane %v378_v27, %v1100_v17  ;;  %v370_v40 = vrot.slane %v363_v30, %v1100_v17  ;;  %v401_v44 = vcombine.low %v330_v61, %v331_v37  ;;  %v328_v48 = vmul.f32 %v1145_v26, %v293_v62 }
  0xeb   :  { %v329_v49 = vmul.f32 %v1148_v12, %v294_v38  ;;  %v274_v47 = vsel %vm268_vm3, %v1092_v6, %v263_v39  ;;  %v282_v55 = vsel %vm268_vm3, %v263_v39, %v1092_v6  ;;  %v273_v35 = vsel %vm268_vm3, %v1094_v9, %v261_v41 }
  0xec   :  { %v485_v2 = vadd.f32 %v385_v42, %v1117_v23  ;;  %v484_v50 = vadd.f32 %v370_v40, %v1109_v21  ;;  %v408_v51 = vrot.slane %v401_v44, %v1100_v17  ;;  %v299_v52 = vsel %vm1131_vm1, %v225_v19, %v282_v55 }
  0xed   :  { %v386_v0 = vcombine.low %v328_v48, %v329_v49  ;;  %v300_v56 = vsel %vm1135_vm2, %v233_v36, %v274_v47  ;;  %v334_v5 = vmul.f32 %v1145_v26, %v299_v52  ;;  %v281_v6 = vsel %vm268_vm3, %v261_v41, %v1094_v9  ;;  %v267_v13 = vpop.permute.xlu1 %266  ;;  %v265_v14 = vpop.permute.xlu0 %264 }
  0xee   :  { %497 = vst.msk [vmem:[#allocation8 + $0x2] sm:$0x3] %vm1175_vm4, %v485_v2  ;;  %496 = vst.msk [vmem:[#allocation8] sm:$0x3] %vm1175_vm4, %v484_v50  ;;  %v415_v21 = vrot.slane %v408_v51, %v1100_v17  ;;  %v335_v23 = vmul.f32 %v1148_v12, %v300_v56  ;;  %v297_v19 = vsel %vm1131_vm1, %v224_v57, %v281_v6 }
  0xef   :  { %v298_v36 = vsel %vm1135_vm2, %v232_v58, %v273_v35  ;;  %v393_v9 = vrot.slane %v386_v0, %v1100_v17  ;;  %v332_v20 = vmul.f32 %v1145_v26, %v297_v19  ;;  %v276_v11 = vsel %vm268_vm3, %v1123_v3, %v267_v13 }
  0xf0   :  { %v333_v8 = vmul.f32 %v1148_v12, %v298_v36  ;;  %v487_v45 = vadd.f32 %v415_v21, %v1113_v22  ;;  %v431_v53 = vcombine.low %v334_v5, %v335_v23  ;;  %v284_v57 = vsel %vm268_vm3, %v267_v13, %v1123_v3 }
  0xf1   :  { %v304_v58 = vsel %vm1135_vm2, %v235_v63, %v276_v11  ;;  %v400_v46 = vrot.slane %v393_v9, %v1100_v17  ;;  %v303_v27 = vsel %vm1131_vm1, %v1200_v59, %v284_v57  ;;  %v555_v61 = vpop.permute.xlu1 %554  ;;  %v1286_v37 = vpop.permute.xlu0 %552  ;;  %v275_v63 = vsel %vm268_vm3, %v1125_v24, %v265_v14 }
  0xf2   :  { %v416_v54 = vcombine.low %v332_v20, %v333_v8  ;;  %v339_v30 = vmul.f32 %v1148_v12, %v304_v58  ;;  %499 = vst.msk [vmem:[#allocation8 + $0x6] sm:$0x3] %vm1175_vm4, %v487_v45  ;;  %v438_v22 = vrot.slane %v431_v53, %v1100_v17  ;;  %v338_v3 = vmul.f32 %v1145_v26, %v303_v27 }
  0xf3   :  { %v283_v59 = vsel %vm268_vm3, %v265_v14, %v1125_v24  ;;  %v486_v62 = vadd.f32 %v400_v46, %v1104_v18  ;;  %v302_v41 = vsel %vm1135_vm2, %v234_v34, %v275_v63  ;;  %v311_v2 = vmul.f32 %v985_v16, %v1096_v10 }
  0xf4   :  { %v423_v38 = vrot.slane %v416_v54, %v1100_v17  ;;  %v301_v39 = vsel %vm1131_vm1, %v226_v31, %v283_v59  ;;  %v445_v42 = vrot.slane %v438_v22, %v1100_v17  ;;  %v461_v40 = vcombine.low %v338_v3, %v339_v30 }
  0xf5   :  { %v336_v44 = vmul.f32 %v1145_v26, %v301_v39  ;;  %v337_v48 = vmul.f32 %v1148_v12, %v302_v41  ;;  %498 = vst.msk [vmem:[#allocation8 + $0x4] sm:$0x3] %vm1175_vm4, %v486_v62  ;;  %v1310_v24 = vpop.permute.xlu1 %558  ;;  %v1312_v49 = vpop.permute.xlu0 %556  ;;  %v312_v31 = vmul.f32 %v983_v15, %v1096_v10 }
  0xf6   :  { %v430_v18 = vrot.slane %v423_v38, %v1100_v17  ;;  %v489_v34 = vadd.f32 %v445_v42, %v1121_v1  ;;  %v468_v47 = vrot.slane %v461_v40, %v1100_v17 }
  0xf7   :  { %v446_v55 = vcombine.low %v336_v44, %v337_v48 }
  0xf8   :  { %v488_v35 = vadd.f32 %v430_v18, %v1129_v4  ;;  %501 = vst.msk [vmem:[#allocation8 + $0xa] sm:$0x3] %vm1175_vm4, %v489_v34  ;;  %v475_v50 = vrot.slane %v468_v47, %v1100_v17 }
  0xf9   :  { %v453_v51 = vrot.slane %v446_v55, %v1100_v17  ;;  %v563_v15 = vpop.permute.xlu1 %562  ;;  %v561_v1 = vpop.permute.xlu0 %560 }
  0xfa   :  { %500 = vst.msk [vmem:[#allocation8 + $0x8] sm:$0x3] %vm1175_vm4, %v488_v35  ;;  %v491_v52 = vadd.f32 %v475_v50, %v312_v31 }
  0xfb   :  { %v460_v4 = vrot.slane %v453_v51, %v1100_v17 }
  0xfc   :  { %503 = vst.msk [vmem:[#allocation8 + $0xe] sm:$0x3] %vm1175_vm4, %v491_v52 }
  0xfd   :  { %v490_v16 = vadd.f32 %v460_v4, %v311_v2  ;;  %v567_v0 = vpop.permute.xlu1 %566  ;;  %v565_v56 = vpop.permute.xlu0 %564 }
  0xff   :  { %502 = vst.msk [vmem:[#allocation8 + $0xc] sm:$0x3] %vm1175_vm4, %v490_v16 }
 0x100   :  { %821 = shalt.err (!%p818_p0)
}
 0x101   :  { %s822_s7 = scalar_lea.hbm %s1451_s3, 256 }
 0x102   :  { %p823_p1 = scmp.ne.s32.totalorder %s1451_s3, %s822_s7  ;;  %p826_p2 = scmp.lt.u32.totalorder %s822_s7, %s1451_s3 }
 0x104   :  { %p828_p3 = pnand %p826_p2, %p823_p1 }
 0x106   :  { %831 = shalt.err (!%p828_p3)
}
 0x107   :  { %711 = dma.vmem_to_hbm [thread:$0]  %s706_s29, 256, %s1451_s3, [#allocation4], %s864_s27, %s864_s27, %s865_s28   ;;  %v579_v5 = vpop.permute.xlu1 %578  ;;  %v577_v6 = vpop.permute.xlu0 %576  ;;  %v609_v21 = vmul.f32 %v1036_v28, %v1096_v10  ;;  %v608_v23 = vmul.f32 %v1038_v29, %v1096_v10  ;;  %v569_v19 = vsel %vm219_vm0, %v555_v61, %v563_v15  ;;  %v573_v36 = vsel %vm219_vm0, %v563_v15, %v555_v61 }
 0x108   :  { %v568_v9 = vsel %vm219_vm0, %v1286_v37, %v561_v1  ;;  %v572_v20 = vsel %vm219_vm0, %v561_v1, %v1286_v37  ;;  %v571_v22 = vsel %vm219_vm0, %v1310_v24, %v567_v0  ;;  %v575_v3 = vsel %vm219_vm0, %v567_v0, %v1310_v24  ;;  %s871_s3 = smov [#allocation9]  }
 0x109   :  { %v570_v63 = vsel %vm219_vm0, %v1312_v49, %v565_v56  ;;  %v574_v59 = vsel %vm219_vm0, %v565_v56, %v1312_v49  ;;  %v611_v1 = vmul.f32 %v1046_v32, %v1096_v10  ;;  %s717_s13 = sshll.u32 %s871_s3, 4  ;;  %s718_s13 = int_to_ptr.vmem [resolvable:$true] %s717_s13 }
 0x10a   :  { %s832_s14 = scalar_lea.vmem %s718_s13, 128  ;;  %p837_p5 = scmp.lt.s32.totalorder %s718_s13, %s718_s13 }
 0x10b   :  { %v583_v13 = vpop.permute.xlu1 %582  ;;  %v581_v14 = vpop.permute.xlu0 %580  ;;  %p833_p4 = scmp.ne.s32.totalorder %s718_s13, %s832_s14  ;;  %p838_p6 = scmp.lt.s32.totalorder %s832_s14, %s832_s14 }
 0x10d   :  { %p839_p7 = por %p838_p6, %p837_p5 }
 0x10f   :  { %v587_v8 = vpop.permute.xlu1 %586  ;;  %v585_v11 = vpop.permute.xlu0 %584  ;;  %p840_p8 = pnand %p839_p7, %p833_p4 }
 0x110   :  { %v593_v28 = vsel %vm268_vm3, %v579_v5, %v587_v8  ;;  %v597_v29 = vsel %vm268_vm3, %v587_v8, %v579_v5  ;;  %v592_v45 = vsel %vm268_vm3, %v577_v6, %v585_v11  ;;  %v596_v53 = vsel %vm268_vm3, %v585_v11, %v577_v6 }
 0x111   :  { %v602_v57 = vsel %vm1131_vm1, %v569_v19, %v597_v29  ;;  %v603_v58 = vsel %vm1135_vm2, %v573_v36, %v593_v28  ;;  %v600_v46 = vsel %vm1131_vm1, %v568_v9, %v596_v53  ;;  %v601_v54 = vsel %vm1135_vm2, %v572_v20, %v592_v45 }
 0x112   :  { %v614_v27 = vmul.f32 %v602_v57, %v1145_v26  ;;  %v615_v30 = vmul.f32 %v603_v58, %v1148_v12  ;;  %v612_v61 = vmul.f32 %v600_v46, %v1145_v26  ;;  %v613_v37 = vmul.f32 %v601_v54, %v1148_v12 }
 0x113   :  { %v591_v62 = vpop.permute.xlu1 %590  ;;  %v589_v38 = vpop.permute.xlu0 %588 }
 0x114   :  { %v643_v39 = vcombine.low %v614_v27, %v615_v30  ;;  %v628_v41 = vcombine.low %v612_v61, %v613_v37  ;;  %v595_v42 = vsel %vm268_vm3, %v583_v13, %v591_v62  ;;  %v599_v40 = vsel %vm268_vm3, %v591_v62, %v583_v13 }
 0x115   :  { %v606_v44 = vsel %vm1131_vm1, %v571_v22, %v599_v40  ;;  %v607_v48 = vsel %vm1135_vm2, %v575_v3, %v595_v42  ;;  %v594_v18 = vsel %vm268_vm3, %v581_v14, %v589_v38  ;;  %v598_v24 = vsel %vm268_vm3, %v589_v38, %v581_v14 }
 0x116   :  { %v650_v49 = vrot.slane %v643_v39, %v1100_v17  ;;  %v635_v31 = vrot.slane %v628_v41, %v1100_v17  ;;  %v618_v34 = vmul.f32 %v606_v44, %v1145_v26  ;;  %v619_v47 = vmul.f32 %v607_v48, %v1148_v12 }
 0x117   :  { %v604_v55 = vsel %vm1131_vm1, %v570_v63, %v598_v24  ;;  %v605_v35 = vsel %vm1135_vm2, %v574_v59, %v594_v18 }
 0x118   :  { %v657_v2 = vrot.slane %v650_v49, %v1100_v17  ;;  %v642_v50 = vrot.slane %v635_v31, %v1100_v17  ;;  %v673_v60 = vcombine.low %v618_v34, %v619_v47  ;;  %v616_v51 = vmul.f32 %v604_v55, %v1145_v26 }
 0x119   :  { %v617_v15 = vmul.f32 %v605_v35, %v1148_v12  ;;  %v610_v26 = vmul.f32 %v1048_v33, %v1096_v10 }
 0x11a   :  { %v680_v52 = vrot.slane %v673_v60, %v1100_v17  ;;  %v692_v4 = vadd.f32 %v642_v50, %v608_v23  ;;  %v693_v25 = vadd.f32 %v657_v2, %v609_v21 }
 0x11b   :  { %v658_v16 = vcombine.low %v616_v51, %v617_v15 }
 0x11c   :  { %v687_v7 = vrot.slane %v680_v52, %v1100_v17  ;;  %696 = vst.msk [vmem:[#allocation9] sm:$0x3] %vm1175_vm4, %v692_v4  ;;  %697 = vst.msk [vmem:[#allocation9 + $0x2] sm:$0x3] %vm1175_vm4, %v693_v25 }
 0x11d   :  { %v665_v12 = vrot.slane %v658_v16, %v1100_v17 }
 0x11e   :  { %v695_v0 = vadd.f32 %v687_v7, %v611_v1 }
 0x11f   :  { %v672_v32 = vrot.slane %v665_v12, %v1100_v17 }
 0x120   :  { %699 = vst.msk [vmem:[#allocation9 + $0x6] sm:$0x3] %vm1175_vm4, %v695_v0 }
 0x121   :  { %v694_v56 = vadd.f32 %v672_v32, %v610_v26 }
 0x123   :  { %698 = vst.msk [vmem:[#allocation9 + $0x4] sm:$0x3] %vm1175_vm4, %v694_v56 }
 0x124   :  { %843 = shalt.err (!%p840_p8)
}
 0x125   :  { %s844_s17 = scalar_lea.hbm %s1452_s4, 128 }
 0x126   :  { %p845_p9 = scmp.ne.s32.totalorder %s1452_s4, %s844_s17  ;;  %p848_p10 = scmp.lt.u32.totalorder %s844_s17, %s1452_s4 }
 0x128   :  { %p850_p11 = pnand %p848_p10, %p845_p9 }
 0x12a   :  { %853 = shalt.err (!%p850_p11)
}
 0x12b   :  { %723 = dma.vmem_to_hbm [thread:$0]  %s718_s13, 128, %s1452_s4, [#allocation10], %s864_s27, %s864_s27, %s865_s28  }
 0x12c   :  { %858 = dma.done.wait [#allocation4], 256  }
 0x12d   :  { %859 = vsyncadd [#allocation4], 4294967040 }
 0x12e   :  { %860 = dma.done.wait [#allocation10], 128  }
 0x12f   :  { %861 = vsyncadd [#allocation10], 4294967168 }
 0x130   :  { %730 = vsyncpa [#allocation3], 1 }
 0x131   :  { %731 = vsyncpa [#allocation6], 1 }
 0x132   :  { %732 = vsyncpa [#allocation4], 1 }
 0x133   :  { %733 = vsyncpa [#allocation10], 1 }

</bundles_post_ra>
